<compile_context>
chip_gen: v5e
topology: v5e:2x2
jax: 0.10.0
libtpu: 0.0.40
codegen_flags: <defaults>
</compile_context>

<pallas_src>
import numpy as np
import jax
import jax.numpy as jnp
from jax import lax
from jax.experimental import pallas as pl
from jax.experimental.pallas import tpu as pltpu

THETA_INIT = np.float32(np.pi / 4)

H = 32      # hidden width
LANE = 128  # TPU lane width


def make_pinn_kernel(slab):
    """Kernel factory; `slab` (lanes per inner step) is a compile-time const."""

    def pinn_kernel(t_ref, vec_ref, w2_ref, o_ref):
        # t_ref:   (1, TB)  lane-dense batch tile
        # vec_ref: (H, 5)   packed columns [w1 | b1 | b2 | w3 | (b3+theta)]
        # w2_ref:  (H, H)   Linear(32,32).weight (out, in), used as W2 @ h1
        # o_ref:   (1, TB)  lane-dense output tile
        vp = vec_ref[...]                    # (H, 5), VMEM-resident constants
        w1 = vp[:, 0:1]                      # (H, 1)
        b1 = vp[:, 1:2]
        b2 = vp[:, 2:3]
        w3 = vp[:, 3:4]
        out_bias = vp[0:1, 4:5]              # (1, 1) = b3 + theta_init
        w2 = w2_ref[...]                     # (H, H)

        tb = t_ref.shape[1]
        n_slabs = tb // slab                 # static

        def body(j, carry):
            off = pl.multiple_of(j * slab, slab)
            t_s = t_ref[:, pl.ds(off, slab)]                       # (1, slab)

            # Layer 1 (VPU): rank-1 broadcast multiply-add.
            h1 = jnp.tanh(w1 * t_s + b1)                           # (H, slab)

            # Layer 2 (MXU): (H,H) @ (H,slab) + (H,1).
            h2 = jnp.tanh(
                jnp.dot(w2, h1, preferred_element_type=jnp.float32) + b2
            )                                                      # (H, slab)

            # Layer 3: 32-term sublane reduce (VPU/XLU), no N=1 matmul.
            out = jnp.sum(w3 * h2, axis=0, keepdims=True)          # (1, slab)

            o_ref[:, pl.ds(off, slab)] = (out + out_bias).astype(o_ref.dtype)
            return carry

        lax.fori_loop(0, n_slabs, body, 0, unroll=min(8, max(1, n_slabs)))

    return pinn_kernel


def pinn_forward(t, params, *, tile_b=32768, slab=512):
    """t: (N, 1) float32. Returns (N, 1) float32.

    tile_b is lane-aligned, clamped to the batch, kept >= 2 grid steps when
    the batch allows it (v7x megacore), and made a multiple of the inner slab
    width. The tail is zero-padded and sliced off.
    """
    w1, b1, w2, b2, w3, b3 = params
    N = t.shape[0]

    lanes_needed = pl.cdiv(N, LANE) * LANE

    # Lane-align the tile; never over-pad a tiny batch past one aligned tile.
    tile_b = max(LANE, (tile_b // LANE) * LANE)
    tile_b = min(tile_b, lanes_needed)

    # Keep >= 2 grid steps when possible so v7x's two TensorCores both work
    # (grid axis is "parallel"); v5e/v6e (1 TC) are unaffected.
    if lanes_needed >= 2 * LANE:
        half = pl.cdiv(pl.cdiv(lanes_needed, 2), LANE) * LANE
        tile_b = min(tile_b, half)

    # Inner slab width: lane-aligned, <= tile_b; make tile_b an exact multiple.
    slab = max(LANE, (slab // LANE) * LANE)
    slab = min(slab, tile_b)
    tile_b = (tile_b // slab) * slab

    padded = pl.cdiv(N, tile_b) * tile_b
    grid = (padded // tile_b,)

    # VMEM budget: double-buffered (1, tile_b) in + out, staged slab
    # intermediates, weights, plus headroom. Capped well under every
    # generation's physical VMEM (v7x: 64 MiB / TC).
    vmem_limit = int(
        2 * 2 * tile_b * 4            # in + out, double-buffered
        + 16 * H * slab * 4           # staged (H, slab) intermediates headroom
        + (H * H + H * 8) * 4         # weights
        + (8 << 20)                   # general headroom
    )
    vmem_limit = min(vmem_limit, 48 << 20)

    # Batch onto the lane axis: (N,1) -> (1, padded). Zero padding is benign
    # (padded lanes are computed and discarded).
    t_row = jnp.pad(jnp.reshape(t, (1, N)), ((0, 0), (0, padded - N)))

    # Pack the column params + fused output bias into one (H,5) VMEM block.
    out_bias_col = jnp.broadcast_to(b3 + THETA_INIT, (H, 1)).astype(jnp.float32)
    vecs = jnp.concatenate([w1, b1, b2, w3, out_bias_col], axis=1)

    out_row = pl.pallas_call(
        make_pinn_kernel(slab),
        out_shape=jax.ShapeDtypeStruct((1, padded), jnp.float32),
        grid_spec=pl.GridSpec(
            grid=grid,
            in_specs=[
                pl.BlockSpec((1, tile_b), lambda i: (0, i)),   # t tile
                pl.BlockSpec((H, 5), lambda i: (0, 0)),        # packed vectors
                pl.BlockSpec((H, H), lambda i: (0, 0)),        # w2
            ],
            out_specs=pl.BlockSpec((1, tile_b), lambda i: (0, i)),
        ),
        compiler_params=pltpu.CompilerParams(
            dimension_semantics=("parallel",),
            vmem_limit_bytes=vmem_limit,
        ),
    )(t_row, vecs, w2)

    return jnp.reshape(out_row[:, :N], (N, 1))


def init_params(key):
    """Deterministic init matching nn.Linear shapes.

    Storage layout (column-vector / torch-weight layout, matching the
    batch-on-lanes kernel):
      w1: (H,1) = Linear(1,32).weight      b1: (H,1) = bias
      w2: (H,H) = Linear(32,32).weight     b2: (H,1) = bias
      w3: (H,1) = Linear(32,1).weight.T    b3: (1,1) = bias
    """
    k1, k2, k3, k4, k5, k6 = jax.random.split(key, 6)

    def unif(k, shape, fan_in):
        bound = 1.0 / np.sqrt(fan_in)
        return jax.random.uniform(k, shape, jnp.float32, -bound, bound)

    w1 = unif(k1, (H, 1), 1)
    b1 = unif(k2, (H, 1), 1)
    w2 = unif(k3, (H, H), H)
    b2 = unif(k4, (H, 1), H)
    w3 = unif(k5, (H, 1), H)
    b3 = unif(k6, (1, 1), H)
    return (w1, b1, w2, b2, w3, b3)


def pinn_reference(t, params):
    """Pure-JAX reference with torch.nn.Linear semantics (batch on rows)."""
    w1, b1, w2, b2, w3, b3 = params
    h1 = jnp.tanh(t @ w1.T + b1.T)
    h2 = jnp.tanh(h1 @ w2.T + b2.T)
    return h2 @ w3 + b3 + THETA_INIT


if __name__ == "__main__":
    key = jax.random.PRNGKey(0)
    kp, kt1, kt2, kt3 = jax.random.split(key, 4)

    params = init_params(kp)

    # Small batch (single tile, padded 16 -> 128, slab clamps to 128).
    N1 = 16
    t1 = jax.random.uniform(kt1, (N1, 1), jnp.float32, 0.0, 10.0)
    out1 = jax.block_until_ready(pinn_forward(t1, params))
    ref1 = pinn_reference(t1, params)
    assert out1.shape == (N1, 1), out1.shape
    np.testing.assert_allclose(np.asarray(out1), np.asarray(ref1),
                               rtol=1e-5, atol=1e-5)

    # Non-multiple batch: exercises padding, the >=2-grid-step clamp and a
    # multi-step grid (300 -> tile 256, grid=(2,)).
    N2 = 300
    t2 = jax.random.uniform(kt2, (N2, 1), jnp.float32, 0.0, 10.0)
    out2 = jax.block_until_ready(pinn_forward(t2, params))
    ref2 = pinn_reference(t2, params)
    assert out2.shape == (N2, 1), out2.shape
    np.testing.assert_allclose(np.asarray(out2), np.asarray(ref2),
                               rtol=1e-5, atol=1e-5)

    # Exercises the inner multi-slab loop (tile 512, slab 256 -> 2 slabs/step).
    N3 = 2000
    t3 = jax.random.uniform(kt3, (N3, 1), jnp.float32, 0.0, 10.0)
    out3 = jax.block_until_ready(pinn_forward(t3, params, tile_b=512, slab=256))
    ref3 = pinn_reference(t3, params)
    assert out3.shape == (N3, 1), out3.shape
    np.testing.assert_allclose(np.asarray(out3), np.asarray(ref3),
                               rtol=1e-5, atol=1e-5)

    print("KERNEL_OK")
</pallas_src>

<mosaic_0001>
module attributes {stable_mosaic.version = 11 : i64} {
  func.func @pinn_kernel(%arg0: i32, %arg1: memref<1x128xf32, #tpu.memory_space<vmem>>, %arg2: memref<32x5xf32, #tpu.memory_space<vmem>>, %arg3: memref<32x32xf32, #tpu.memory_space<vmem>>, %arg4: memref<1x128xf32, #tpu.memory_space<vmem>>) attributes {dimension_semantics = [#tpu.dimension_semantics<parallel>], iteration_bounds = array<i64: 1>, scalar_prefetch = 0 : i64, scratch_operands = 0 : i64, tpu.core_type = #tpu.core_type<tc>, window_params = [{transform_indices = @transform_0, window_bounds = array<i64: 1, 128>}, {pipeline_mode = #tpu.pipeline_mode<synchronous>, transform_indices = @transform_1, window_bounds = array<i64: 32, 5>}, {pipeline_mode = #tpu.pipeline_mode<synchronous>, transform_indices = @transform_2, window_bounds = array<i64: 32, 32>}, {transform_indices = @transform_3, window_bounds = array<i64: 1, 128>}]} {
    %c0 = arith.constant 0 : index
    %c0_0 = arith.constant 0 : index
    %0 = vector.load %arg2[%c0, %c0_0] : memref<32x5xf32, #tpu.memory_space<vmem>>, vector<32x5xf32>
    %1 = vector.extract_strided_slice %0 {offsets = [0, 0], sizes = [32, 1], strides = [1, 1]} : vector<32x5xf32> to vector<32x1xf32>
    %2 = vector.extract_strided_slice %0 {offsets = [0, 1], sizes = [32, 1], strides = [1, 1]} : vector<32x5xf32> to vector<32x1xf32>
    %3 = vector.extract_strided_slice %0 {offsets = [0, 2], sizes = [32, 1], strides = [1, 1]} : vector<32x5xf32> to vector<32x1xf32>
    %4 = vector.extract_strided_slice %0 {offsets = [0, 3], sizes = [32, 1], strides = [1, 1]} : vector<32x5xf32> to vector<32x1xf32>
    %5 = vector.extract_strided_slice %0 {offsets = [0, 4], sizes = [1, 1], strides = [1, 1]} : vector<32x5xf32> to vector<1x1xf32>
    %c0_1 = arith.constant 0 : index
    %c0_2 = arith.constant 0 : index
    %6 = vector.load %arg3[%c0_1, %c0_2] : memref<32x32xf32, #tpu.memory_space<vmem>>, vector<32x32xf32>
    %c0_i32 = arith.constant 0 : i32
    %c128_i32 = arith.constant 128 : i32
    %7 = arith.muli %c0_i32, %c128_i32 : i32
    %8 = tpu.assume_multiple %7, 128 : i32
    %c0_3 = arith.constant 0 : index
    %9 = arith.index_cast %8 : i32 to index
    %10 = vector.load %arg1[%c0_3, %9] : memref<1x128xf32, #tpu.memory_space<vmem>>, vector<1x128xf32>
    %11 = vector.broadcast %1 : vector<32x1xf32> to vector<32x128xf32>
    %12 = vector.broadcast %10 : vector<1x128xf32> to vector<32x128xf32>
    %13 = arith.mulf %11, %12 : vector<32x128xf32>
    %14 = vector.broadcast %2 : vector<32x1xf32> to vector<32x128xf32>
    %15 = arith.addf %13, %14 : vector<32x128xf32>
    %16 = math.tanh %15 : vector<32x128xf32>
    %cst = arith.constant dense<0.000000e+00> : vector<32x128xf32>
    %17 = tpu.matmul %6, %16, %cst {dimension_numbers = #tpu.dot_dimension_numbers<[1], [0], [0], [1], [0, 0, 1, 1], [], []>} : vector<32x32xf32>, vector<32x128xf32>, vector<32x128xf32> -> vector<32x128xf32>
    %18 = vector.broadcast %3 : vector<32x1xf32> to vector<32x128xf32>
    %19 = arith.addf %17, %18 : vector<32x128xf32>
    %20 = math.tanh %19 : vector<32x128xf32>
    %21 = vector.broadcast %4 : vector<32x1xf32> to vector<32x128xf32>
    %22 = arith.mulf %21, %20 : vector<32x128xf32>
    %cst_4 = arith.constant dense<0.000000e+00> : vector<128xf32>
    %23 = vector.multi_reduction <add>, %22, %cst_4 [0] : vector<32x128xf32> to vector<128xf32>
    %24 = vector.shape_cast %23 : vector<128xf32> to vector<1x128xf32>
    %25 = vector.broadcast %5 : vector<1x1xf32> to vector<1x128xf32>
    %26 = arith.addf %24, %25 : vector<1x128xf32>
    %c0_5 = arith.constant 0 : index
    %27 = arith.index_cast %8 : i32 to index
    %28 = vector.load %arg4[%c0_5, %27] : memref<1x128xf32, #tpu.memory_space<vmem>>, vector<1x128xf32>
    tpu.vector_store %arg4[%c0_5, %27], %26 {strides = array<i32>} : memref<1x128xf32, #tpu.memory_space<vmem>>, vector<1x128xf32>,
    %c1_i32 = arith.constant 1 : i32
    return
  }
  func.func @transform_0(%arg0: i32) -> (i32, i32) {
    %c0_i32 = arith.constant 0 : i32
    %c0_i32_0 = arith.constant 0 : i32
    return %c0_i32, %arg0 : i32, i32
  }
  func.func @transform_1(%arg0: i32) -> (i32, i32) {
    %c0_i32 = arith.constant 0 : i32
    %c0_i32_0 = arith.constant 0 : i32
    %c0_i32_1 = arith.constant 0 : i32
    return %c0_i32, %c0_i32_0 : i32, i32
  }
  func.func @transform_2(%arg0: i32) -> (i32, i32) {
    %c0_i32 = arith.constant 0 : i32
    %c0_i32_0 = arith.constant 0 : i32
    %c0_i32_1 = arith.constant 0 : i32
    return %c0_i32, %c0_i32_0 : i32, i32
  }
  func.func @transform_3(%arg0: i32) -> (i32, i32) {
    %c0_i32 = arith.constant 0 : i32
    %c0_i32_0 = arith.constant 0 : i32
    return %c0_i32, %arg0 : i32, i32
  }
}

</mosaic_0001>

<bundles_post_ra>
// kernel: tpu_custom_call.1
= control target key start
LH: loop header
LB: loop body
LE: loop exit
PB: predicated region body
PF: predicated region fallthrough
CT: control target
= control target key end

     0   :  { %v266_v1 = vmov 0   ;;  %v267_v2 = vmov 1   ;;  %s328_s0 = inlined_call_operand.vmem [shape: f32[1,128], index: 0, kind: input, shape index: {}]   ;;  %s329_s1 = inlined_call_operand.vmem [shape: f32[32,5], index: 1, kind: input, shape index: {}]   ;;  %s330_s2 = inlined_call_operand.vmem [shape: f32[32,32], index: 2, kind: input, shape index: {}]   ;;  %s331_s3 = inlined_call_operand.hbm [shape: f32[1,128], index: 3, kind: output, shape index: {}]  }
   0x1   :  { %v295_v0 = vld [vmem:[%s329_s1 + $0x18] sm:$0xff]  ;;  %210 = vset.pattern.permute.xlu0 %v266_v1  ;;  %211 = vset.pattern.permute.xlu1 %v267_v2 }
   0x2   :  { %41 = vperm.xlu0 %210, %v295_v0   ;;  %64 = vperm.xlu1 %211, %v295_v0  }
   0x3   :  { %8 = vsyncpa [#allocation3], 0  ;;  %v17_v3 = vld [vmem:[%s329_s1 + $0x10] sm:$0xff]  ;;  %213 = vset.pattern.permute.xlu2 %v267_v2  ;;  %v16_v4 = vld [vmem:[%s329_s1 + $0x8] sm:$0xff]  ;;  %v268_v7 = vmov 2   ;;  %v269_v14 = vmov 3  }
   0x4   :  { %60 = vperm.xlu2 %213, %v17_v3   ;;  %v15_v5 = vld [vmem:[%s329_s1] sm:$0xff]  ;;  %v270_v15 = vmov 4   ;;  %vm91_vm0 = vcmask 261120   ;;  %v20_v31 = vld [vmem:[%s330_s2 + $0x8] sm:$0xff]  ;;  %v21_v32 = vld [vmem:[%s330_s2 + $0x10] sm:$0xff]  ;;  %s179_s4 = sshll.u32 %s331_s3, 4  ;;  %s180_s4 = int_to_ptr.hbm [resolvable:$true] %s179_s4 }
   0x5   :  { %v223_v6 = vld [vmem:[%s328_s0] ss:$0 sm:$0xff]  ;;  %v22_v33 = vld [vmem:[%s330_s2 + $0x18] sm:$0xff] }
   0x6   :  { %v19_v30 = vld [vmem:[%s330_s2] sm:$0xff]  ;;  %s271_s2 = smov [#allocation2]  }
   0x7   :  { %s177_s28 = sshll.u32 %s271_s2, 4  ;;  %s178_s28 = int_to_ptr.vmem [resolvable:$true] %s177_s28 }
   0xa   :  { %36 = vperm.xlu0 %210, %v17_v3   ;;  %212 = vset.pattern.permute.xlu1 %v266_v1 }
   0xb   :  { %31 = vperm.xlu1 %212, %v16_v4  }
   0xc   :  { %214 = vset.pattern.permute.xlu2 %v266_v1 }
   0xd   :  { %26 = vperm.xlu2 %214, %v15_v5  }
  0x12   :  { %215 = vset.pattern.permute.xlu0 %v267_v2 }
  0x13   :  { %56 = vperm.xlu0 %215, %v16_v4   ;;  %216 = vset.pattern.permute.xlu1 %v267_v2 }
  0x14   :  { %52 = vperm.xlu1 %216, %v15_v5  }
  0x15   :  { %217 = vset.pattern.permute.xlu2 %v268_v7 }
  0x16   :  { %76 = vperm.xlu2 %217, %v15_v5  }
  0x1b   :  { %219 = vset.pattern.permute.xlu0 %v268_v7 }
  0x1c   :  { %218 = vset.pattern.permute.xlu1 %v268_v7  ;;  %88 = vperm.xlu0 %219, %v295_v0  }
  0x1d   :  { %80 = vperm.xlu1 %218, %v16_v4  }
  0x1e   :  { %84 = vperm.xlu2 %217, %v17_v3  }
  0x24   :  { %222 = vset.pattern.permute.xlu0 %v270_v15 }
  0x25   :  { %220 = vset.pattern.permute.xlu1 %v269_v14  ;;  %167 = vperm.xlu0 %222, %v15_v5  }
  0x26   :  { %138 = vperm.xlu1 %220, %v15_v5   ;;  %221 = vset.pattern.permute.xlu2 %v269_v14 }
  0x27   :  { %142 = vperm.xlu2 %221, %v16_v4  }
  0x2e   :  { %146 = vperm.xlu1 %220, %v17_v3  }
  0x2f   :  { %150 = vperm.xlu2 %221, %v295_v0  }
  0x5e   :  { %v61_v11 = vpop.permute.xlu2 %60 }
  0x67   :  { %v27_v20 = vpop.permute.xlu2 %26 }
  0x68   :  { %v47_v21 = vmul.f32 %v223_v6, %v27_v20 }
  0x70   :  { %v77_v34 = vpop.permute.xlu2 %76 }
  0x74   :  { %v42_v8 = vpop.permute.xlu0 %41  ;;  %v65_v9 = vpop.permute.xlu1 %64 }
  0x75   :  { %v50_v10 = vmul.f32 %v223_v6, %v42_v8 }
  0x77   :  { %v70_v12 = vadd.f32 %v65_v9, %v50_v10 }
  0x78   :  { %v85_v36 = vpop.permute.xlu2 %84 }
  0x79   :  { %224 = vtanh.f32 %v70_v12 }
  0x7c   :  { %v37_v13 = vpop.permute.xlu0 %36 }
  0x7d   :  { %v49_v16 = vmul.f32 %v223_v6, %v37_v13  ;;  %v32_v17 = vpop.permute.xlu1 %31 }
  0x7e   :  { %v48_v22 = vmul.f32 %v223_v6, %v32_v17 }
  0x7f   :  { %v225_v18 = vpop.eup %224  ;;  %v69_v19 = vadd.f32 %v61_v11, %v49_v16 }
  0x80   :  { %116 = vmatpush.msra.mxu0 %v225_v18  ;;  %192 = vmatpush.msra.mxu1 %v225_v18 }
  0x81   :  { %226 = vtanh.f32 %v69_v19  ;;  %193 = vmatpush.msra.mxu2 %v225_v18  ;;  %194 = vmatpush.msra.mxu3 %v225_v18  ;;  %v143_v45 = vpop.permute.xlu2 %142 }
  0x85   :  { %v57_v23 = vpop.permute.xlu0 %56 }
  0x86   :  { %v68_v24 = vadd.f32 %v57_v23, %v48_v22  ;;  %v53_v25 = vpop.permute.xlu1 %52 }
  0x87   :  { %v227_v26 = vpop.eup %226  ;;  %v67_v27 = vadd.f32 %v53_v25, %v47_v21 }
  0x88   :  { %228 = vtanh.f32 %v68_v24  ;;  %117 = vmatpush.msra.mxu0 %v227_v26  ;;  %195 = vmatpush.msra.mxu1 %v227_v26 }
  0x89   :  { %230 = vtanh.f32 %v67_v27  ;;  %196 = vmatpush.msra.mxu2 %v227_v26  ;;  %197 = vmatpush.msra.mxu3 %v227_v26  ;;  %v151_v57 = vpop.permute.xlu2 %150 }
  0x8e   :  { %v229_v28 = vpop.eup %228  ;;  %v89_v41 = vpop.permute.xlu0 %88 }
  0x8f   :  { %v231_v29 = vpop.eup %230  ;;  %118 = vmatpush.msra.mxu0 %v229_v28  ;;  %198 = vmatpush.msra.mxu1 %v229_v28  ;;  %v81_v35 = vpop.permute.xlu1 %80 }
  0x90   :  { %199 = vmatpush.msra.mxu2 %v229_v28  ;;  %200 = vmatpush.msra.mxu3 %v229_v28 }
  0x91   :  { %119 = vmatpush.msra.mxu0 %v231_v29  ;;  %201 = vmatpush.msra.mxu1 %v231_v29 }
  0x92   :  { %202 = vmatpush.msra.mxu2 %v231_v29  ;;  %203 = vmatpush.msra.mxu3 %v231_v29 }
  0x93   :  { %188 = vmatmul.msk.f32.vlgmr.msra.gmra.mxu0 %vm91_vm0, %v19_v30  ;;  %189 = vmatmul.msk.f32.vlgmr.msra.gmra.mxu1 %vm91_vm0, %v20_v31 }
  0x94   :  { %190 = vmatmul.msk.f32.vlgmr.msra.gmra.mxu2 %vm91_vm0, %v21_v32  ;;  %191 = vmatmul.msk.f32.vlgmr.msra.gmra.mxu3 %vm91_vm0, %v22_v33 }
  0x97   :  { %v168_v2 = vpop.permute.xlu0 %167 }
  0x98   :  { %v139_v42 = vpop.permute.xlu1 %138 }
  0xa0   :  { %v147_v53 = vpop.permute.xlu1 %146 }
 0x110   :  { %v121_v37 = vpop.f32.mrf.mxu0  ;;  %v124_v38 = vpop.f32.mrf.mxu1 }
 0x111   :  { %v122_v39 = vadd.f32 %v121_v37, %v77_v34  ;;  %v125_v40 = vadd.f32 %v124_v38, %v81_v35 }
 0x113   :  { %232 = vtanh.f32 %v122_v39 }
 0x114   :  { %234 = vtanh.f32 %v125_v40 }
 0x117   :  { %v127_v43 = vpop.f32.mrf.mxu2  ;;  %v130_v44 = vpop.f32.mrf.mxu3 }
 0x118   :  { %v128_v46 = vadd.f32 %v127_v43, %v85_v36  ;;  %v131_v47 = vadd.f32 %v130_v44, %v89_v41 }
 0x119   :  { %v233_v48 = vpop.eup %232 }
 0x11a   :  { %v235_v49 = vpop.eup %234  ;;  %236 = vtanh.f32 %v128_v46  ;;  %v153_v50 = vmul.f32 %v233_v48, %v139_v42 }
 0x11b   :  { %238 = vtanh.f32 %v131_v47  ;;  %v154_v51 = vmul.f32 %v235_v49, %v143_v45 }
 0x11d   :  { %v157_v55 = vadd.f32 %v154_v51, %v153_v50 }
 0x120   :  { %v237_v52 = vpop.eup %236 }
 0x121   :  { %v239_v54 = vpop.eup %238  ;;  %v155_v56 = vmul.f32 %v237_v52, %v147_v53 }
 0x122   :  { %v156_v59 = vmul.f32 %v239_v54, %v151_v57 }
 0x123   :  { %v158_v58 = vadd.f32 %v157_v55, %v155_v56 }
 0x125   :  { %v159_v60 = vadd.f32 %v158_v58, %v156_v59 }
 0x127   :  { %v160_v61 = vrot.slane %v159_v60, 4 }
 0x129   :  { %v161_v62 = vadd.f32 %v160_v61, %v159_v60 }
 0x12b   :  { %v162_v63 = vrot.slane %v161_v62, 2 }
 0x12d   :  { %v163_v0 = vadd.f32 %v162_v63, %v161_v62 }
 0x12f   :  { %v164_v1 = vrot.slane %v163_v0, 1 }
 0x131   :  { %v165_v3 = vadd.f32 %v164_v1, %v163_v0 }
 0x133   :  { %v170_v4 = vadd.f32 %v168_v2, %v165_v3 }
 0x135   :  { %171 = vst [vmem:[#allocation2] sm:$0x1] %v170_v4 }
 0x136   :  { %182 = dma.vmem_to_hbm [thread:$0]  %s178_s28, 16, %s180_s4, [#allocation3]  }
 0x137   :  { %264 = dma.done.wait [#allocation3], 16  }
 0x138   :  { %265 = vsyncadd [#allocation3], 4294967280 }
 0x139   :  { %187 = vsyncpa [#allocation3], 1 }

</bundles_post_ra>
